<compile_context>
chip_gen: v6e
topology: v6e:2x2x1
jax: 0.10.0
libtpu: 0.0.40
codegen_flags: <defaults>
</compile_context>

<pallas_src>
import functools

import jax
import jax.numpy as jnp
from jax.experimental import pallas as pl
from jax.experimental.pallas import tpu as pltpu


def _norm_kernel(x_ref, alpha_ref, bias_ref, o_ref, *, eps):
    x = x_ref[...].astype(jnp.float32)                        # (tile_rows, d)
    d = x.shape[-1]

    mean = jnp.mean(x, axis=-1, keepdims=True)                 # (tile_rows, 1)
    xc = x - mean
    # Unbiased variance (ddof=1) to match torch.std default. Done as a jnp
    # divide on the (tile_rows, 1) column so d == 1 yields NaN like torch.
    var = jnp.sum(xc * xc, axis=-1, keepdims=True) / jnp.float32(d - 1)
    std = jnp.sqrt(var)

    # Column-wise reciprocal (EUP) instead of a full-tile VPU divide.
    # approx=False keeps the 1e-5 tolerance vs. the torch reference.
    inv = pl.reciprocal(std + jnp.float32(eps), approx=False)  # (tile_rows, 1)

    alpha = alpha_ref[...]                                     # (1, d) f32
    bias = bias_ref[...]                                       # (1, d) f32
    out = (xc * inv) * alpha + bias
    # Note: rows of the ragged last block compute on whatever is in VMEM but
    # are never written back; all math above is strictly row-local.
    o_ref[...] = out.astype(o_ref.dtype)


# Fixed scoped-VMEM request. With tiles capped at ~4 MiB (f32 working set) the
# worst-case live set (2x in + 2x out buffers + ~3 full-tile f32 temporaries)
# is ~28 MiB, so 48 MiB is safe on v5e/v6e (128 MiB) and v7x (64 MiB) alike.
_VMEM_LIMIT_BYTES = 48 * 1024 * 1024


def _pick_tile_rows(rows, d, itemsize):
    """Row tile with ~3 MiB (cap 4 MiB) f32 working set, sublane-aligned."""
    # Sublane packing multiple per element width (f32:8, bf16:16, int8/fp8:32).
    mult = {4: 8, 2: 16, 1: 32}.get(itemsize, 8)
    row_f32_bytes = max(d * 4, 1)            # in-kernel temporaries are f32
    target_bytes = 3 << 20                   # ~3 MiB target per tile
    hard_cap_bytes = 4 << 20                 # never exceed ~4 MiB per tile

    tr = max(target_bytes // row_f32_bytes, mult)
    if rows >= 512:
        tr = max(tr, 512)                    # 512-row floor when rows allow
    tr = min(tr, max(hard_cap_bytes // row_f32_bytes, mult))  # byte hard cap
    tr = min(tr, 4096)
    # Don't make the block larger than the (sublane-rounded) row count.
    tr = min(tr, pl.cdiv(rows, mult) * mult)
    tr = max((tr // mult) * mult, mult)
    return int(tr)


def norm_pallas(x, alpha, bias, eps=1e-6, tile_rows=None):
    """x: (..., d_model); alpha, bias: (d_model,)."""
    orig_shape = x.shape
    d = orig_shape[-1]
    # Contiguous (row-major, last-dim-minor) activations: this reshape is a
    # metadata-only view, no extra HBM pass. Callers holding a transposed view
    # should materialize it themselves (it would otherwise cost a full HBM
    # round trip outside the kernel).
    x2 = x.reshape(-1, d)
    rows = x2.shape[0]

    # Cast params once in the wrapper so the kernel never re-casts per block.
    alpha2 = alpha.astype(jnp.float32).reshape(1, d)
    bias2 = bias.astype(jnp.float32).reshape(1, d)

    itemsize = jnp.dtype(x2.dtype).itemsize
    if tile_rows is None:
        tile_rows = _pick_tile_rows(rows, d, itemsize)

    grid = (pl.cdiv(rows, tile_rows),)   # ragged last block handled by Pallas

    # TODO(synk): when d_model % 128 != 0 the output stores are lane-masked
    # (vst.msk); on v5e's single store slot a lane-dense repack (fold rows onto
    # lanes) would help, but typical transformer d_model is already a multiple
    # of 128.

    kernel = functools.partial(_norm_kernel, eps=eps)

    out = pl.pallas_call(
        kernel,
        out_shape=jax.ShapeDtypeStruct((rows, d), x.dtype),
        grid_spec=pltpu.PrefetchScalarGridSpec(
            num_scalar_prefetch=0,
            grid=grid,
            in_specs=[
                pl.BlockSpec((tile_rows, d), lambda i: (i, 0)),
                pl.BlockSpec((1, d), lambda i: (0, 0)),   # alpha: stays resident
                pl.BlockSpec((1, d), lambda i: (0, 0)),   # bias:  stays resident
            ],
            out_specs=pl.BlockSpec((tile_rows, d), lambda i: (i, 0)),
        ),
        compiler_params=pltpu.CompilerParams(
            # Row blocks are independent.
            dimension_semantics=("parallel",),
            vmem_limit_bytes=_VMEM_LIMIT_BYTES,
        ),
    )(x2, alpha2, bias2)

    return out.reshape(orig_shape)


def norm_ref(x, alpha, bias, eps=1e-6):
    """Pure-JAX reference matching the PyTorch module exactly."""
    mean = jnp.mean(x, axis=-1, keepdims=True)
    xc = x - mean
    d = x.shape[-1]
    std = jnp.sqrt(jnp.sum(xc * xc, axis=-1, keepdims=True) / (d - 1))
    return alpha * xc / (std + eps) + bias


if __name__ == "__main__":
    # Small, lane-dense demo shape: batch=2, seq=8, d_model=128.
    batch, seq, d_model = 2, 8, 128
    key = jax.random.PRNGKey(0)
    x = jax.random.normal(key, (batch, seq, d_model), dtype=jnp.float32)

    # Deterministic parameter init matching nn.Parameter(torch.ones/zeros).
    alpha = jnp.ones((d_model,), dtype=jnp.float32)
    bias = jnp.zeros((d_model,), dtype=jnp.float32)

    out = norm_pallas(x, alpha, bias)
    out = jax.block_until_ready(out)

    ref = norm_ref(x, alpha, bias)
    assert jnp.allclose(out, ref, atol=1e-5, rtol=1e-5), "mismatch vs reference"

    print("KERNEL_OK")
</pallas_src>

<mosaic_0001>
module attributes {stable_mosaic.version = 11 : i64} {
  func.func @_norm_kernel(%arg0: i32, %arg1: memref<16x128xf32, #tpu.memory_space<vmem>>, %arg2: memref<1x128xf32, #tpu.memory_space<vmem>>, %arg3: memref<1x128xf32, #tpu.memory_space<vmem>>, %arg4: memref<16x128xf32, #tpu.memory_space<vmem>>) attributes {dimension_semantics = [#tpu.dimension_semantics<parallel>], iteration_bounds = array<i64: 1>, scalar_prefetch = 0 : i64, scratch_operands = 0 : i64, tpu.core_type = #tpu.core_type<tc>, window_params = [{transform_indices = @transform_0, window_bounds = array<i64: 16, 128>}, {pipeline_mode = #tpu.pipeline_mode<synchronous>, transform_indices = @transform_1, window_bounds = array<i64: 1, 128>}, {pipeline_mode = #tpu.pipeline_mode<synchronous>, transform_indices = @transform_2, window_bounds = array<i64: 1, 128>}, {transform_indices = @transform_3, window_bounds = array<i64: 16, 128>}]} {
    %c0 = arith.constant 0 : index
    %c0_0 = arith.constant 0 : index
    %0 = vector.load %arg1[%c0, %c0_0] : memref<16x128xf32, #tpu.memory_space<vmem>>, vector<16x128xf32>
    %cst = arith.constant dense<0.000000e+00> : vector<16xf32>
    %1 = vector.multi_reduction <add>, %0, %cst [1] : vector<16x128xf32> to vector<16xf32>
    %2 = vector.shape_cast %1 : vector<16xf32> to vector<16x1xf32>
    %cst_1 = arith.constant 1.280000e+02 : f32
    %3 = vector.broadcast %cst_1 : f32 to vector<16x1xf32>
    %4 = arith.divf %2, %3 : vector<16x1xf32>
    %5 = vector.broadcast %4 : vector<16x1xf32> to vector<16x128xf32>
    %6 = arith.subf %0, %5 : vector<16x128xf32>
    %7 = arith.mulf %6, %6 : vector<16x128xf32>
    %cst_2 = arith.constant dense<0.000000e+00> : vector<16xf32>
    %8 = vector.multi_reduction <add>, %7, %cst_2 [1] : vector<16x128xf32> to vector<16xf32>
    %9 = vector.shape_cast %8 : vector<16xf32> to vector<16x1xf32>
    %cst_3 = arith.constant 1.270000e+02 : f32
    %10 = vector.broadcast %cst_3 : f32 to vector<16x1xf32>
    %11 = arith.divf %9, %10 : vector<16x1xf32>
    %12 = math.sqrt %11 : vector<16x1xf32>
    %cst_4 = arith.constant 9.99999997E-7 : f32
    %13 = vector.broadcast %cst_4 : f32 to vector<16x1xf32>
    %14 = arith.addf %12, %13 : vector<16x1xf32>
    %15 = tpu.reciprocal %14 : vector<16x1xf32> -> vector<16x1xf32>
    %c0_5 = arith.constant 0 : index
    %c0_6 = arith.constant 0 : index
    %16 = vector.load %arg2[%c0_5, %c0_6] : memref<1x128xf32, #tpu.memory_space<vmem>>, vector<1x128xf32>
    %c0_7 = arith.constant 0 : index
    %c0_8 = arith.constant 0 : index
    %17 = vector.load %arg3[%c0_7, %c0_8] : memref<1x128xf32, #tpu.memory_space<vmem>>, vector<1x128xf32>
    %18 = vector.broadcast %15 : vector<16x1xf32> to vector<16x128xf32>
    %19 = arith.mulf %6, %18 : vector<16x128xf32>
    %20 = vector.broadcast %16 : vector<1x128xf32> to vector<16x128xf32>
    %21 = arith.mulf %19, %20 : vector<16x128xf32>
    %22 = vector.broadcast %17 : vector<1x128xf32> to vector<16x128xf32>
    %23 = arith.addf %21, %22 : vector<16x128xf32>
    %c0_9 = arith.constant 0 : index
    %c0_10 = arith.constant 0 : index
    %24 = vector.load %arg4[%c0_9, %c0_10] : memref<16x128xf32, #tpu.memory_space<vmem>>, vector<16x128xf32>
    tpu.vector_store %arg4[%c0_9, %c0_10], %23 {strides = array<i32>} : memref<16x128xf32, #tpu.memory_space<vmem>>, vector<16x128xf32>,
    return
  }
  func.func @transform_0(%arg0: i32) -> (i32, i32) {
    %c0_i32 = arith.constant 0 : i32
    %c0_i32_0 = arith.constant 0 : i32
    return %arg0, %c0_i32 : i32, i32
  }
  func.func @transform_1(%arg0: i32) -> (i32, i32) {
    %c0_i32 = arith.constant 0 : i32
    %c0_i32_0 = arith.constant 0 : i32
    %c0_i32_1 = arith.constant 0 : i32
    return %c0_i32, %c0_i32_0 : i32, i32
  }
  func.func @transform_2(%arg0: i32) -> (i32, i32) {
    %c0_i32 = arith.constant 0 : i32
    %c0_i32_0 = arith.constant 0 : i32
    %c0_i32_1 = arith.constant 0 : i32
    return %c0_i32, %c0_i32_0 : i32, i32
  }
  func.func @transform_3(%arg0: i32) -> (i32, i32) {
    %c0_i32 = arith.constant 0 : i32
    %c0_i32_0 = arith.constant 0 : i32
    return %arg0, %c0_i32 : i32, i32
  }
}

</mosaic_0001>

<bundles_post_ra>
// kernel: tpu_custom_call.1
= control target key start
LH: loop header
LB: loop body
LE: loop exit
PB: predicated region body
PF: predicated region fallthrough
CT: control target
= control target key end

     0   :  { %8 = vsyncpa [#allocation3], 0  ;;  %s206_s0 = inlined_call_operand.hbm [shape: f32[16,128], index: 0, kind: input, shape index: {}]   ;;  %s207_s1 = inlined_call_operand.vmem [shape: f32[1,128], index: 1, kind: input, shape index: {}]   ;;  %s208_s2 = inlined_call_operand.vmem [shape: f32[1,128], index: 2, kind: input, shape index: {}]   ;;  %s209_s3 = inlined_call_operand.hbm [shape: f32[16,128], index: 3, kind: output, shape index: {}]  }
   0x1   :  { %9 = vsyncpa [#allocation4], 0  ;;  %s164_s12 = smov [#allocation2]  }
   0x2   :  { %s15_s13 = sshll.u32 %s164_s12, 4  ;;  %s16_s13 = int_to_ptr.vmem [resolvable:$true] %s15_s13 }
   0x3   :  { %s128_s14 = scalar_lea.vmem %s16_s13, 256  ;;  %p133_p1 = scmp.lt.s32.totalorder %s16_s13, %s16_s13 }
   0x4   :  { %p129_p0 = scmp.ne.s32.totalorder %s16_s13, %s128_s14  ;;  %p134_p2 = scmp.lt.s32.totalorder %s128_s14, %s128_s14 }
   0x6   :  { %p135_p3 = por %p134_p2, %p133_p1 }
   0x8   :  { %p136_p4 = pnand %p135_p3, %p129_p0 }
   0xa   :  { %139 = shalt.err (!%p136_p4)
}
   0xb   :  { %s165_s15 = smov 128   ;;  %s166_s16 = smov 8  }
   0xc   :  { %21 = dma.hbm_to_vmem [thread:$0]  %s206_s0, 256, %s16_s13, [#allocation3], %s165_s15, %s165_s15, %s166_s16  }
   0xd   :  { %160 = dma.done.wait [#allocation3], 256  }
   0xe   :  { %161 = vsyncadd [#allocation3], 4294967040  ;;  %v29_v0 = vld [vmem:[#allocation2] sm:$0xff]  ;;  %v30_v1 = vld [vmem:[#allocation2 + $0x8] sm:$0xff]  ;;  %s167_s22 = smov [#allocation5]  }
   0xf   :  { %31 = vadd.xlane.f32.xlu0 %v29_v0  ;;  %v106_v27 = vld [vmem:[%s207_s1] ss:$0 sm:$0xff]  ;;  %s94_s23 = sshll.u32 %s167_s22, 4  ;;  %s95_s23 = int_to_ptr.vmem [resolvable:$true] %s94_s23 }
  0x10   :  { %v107_v29 = vld [vmem:[%s208_s2] ss:$0 sm:$0xff]  ;;  %s140_s24 = scalar_lea.vmem %s95_s23, 256  ;;  %p145_p6 = scmp.lt.s32.totalorder %s95_s23, %s95_s23 }
  0x11   :  { %p141_p5 = scmp.ne.s32.totalorder %s95_s23, %s140_s24  ;;  %p146_p7 = scmp.lt.s32.totalorder %s140_s24, %s140_s24 }
  0x13   :  { %33 = vadd.xlane.f32.xlu0 %v30_v1  ;;  %p147_p8 = por %p146_p7, %p145_p6 }
  0x15   :  { %p148_p9 = pnand %p147_p8, %p141_p5 }
  0x98   :  { %v32_v2 = vpop.xlane.xlu0 %31 }
  0x99   :  { %v36_v3 = vmul.f32 0.0078125, %v32_v2 }
  0x9b   :  { %v38_v4 = vsub.f32 %v29_v0, %v36_v3 }
  0x9c   :  { %v34_v5 = vpop.xlane.xlu0 %33 }
  0x9d   :  { %v37_v6 = vmul.f32 0.0078125, %v34_v5  ;;  %v40_v7 = vmul.f32 %v38_v4, %v38_v4 }
  0x9f   :  { %v39_v8 = vsub.f32 %v30_v1, %v37_v6  ;;  %42 = vadd.xlane.f32.xlu1 %v40_v7 }
  0xa1   :  { %v41_v9 = vmul.f32 %v39_v8, %v39_v8 }
  0xa3   :  { %44 = vadd.xlane.f32.xlu1 %v41_v9 }
 0x128   :  { %v43_v10 = vpop.xlane.xlu1 %42 }
 0x129   :  { %v47_v11 = vmul.f32 0.007874016, %v43_v10 }
 0x12b   :  { %112 = vrsqrt.f32 %v47_v11  ;;  %vm51_vm0 = vcmp.eq.f32.partialorder %v47_v11, inf  ;;  %v54_v16 = vand.u32 2147483648, %v47_v11  ;;  %vm53_vm1 = vcmp.eq.f32.partialorder %v47_v11, 0.0 }
 0x12c   :  { %v45_v12 = vpop.xlane.xlu1 %44 }
 0x12d   :  { %v48_v13 = vmul.f32 0.007874016, %v45_v12 }
 0x12f   :  { %114 = vrsqrt.f32 %v48_v13  ;;  %vm58_vm2 = vcmp.eq.f32.partialorder %v48_v13, inf  ;;  %v61_v22 = vand.u32 2147483648, %v48_v13  ;;  %vm60_vm3 = vcmp.eq.f32.partialorder %v48_v13, 0.0 }
 0x138   :  { %v113_v14 = vpop.eup %112 }
 0x139   :  { %v50_v15 = vmul.f32 %v113_v14, %v47_v11 }
 0x13b   :  { %v52_v17 = vsel %vm51_vm0, %v47_v11, %v50_v15 }
 0x13c   :  { %v115_v18 = vpop.eup %114  ;;  %v55_v19 = vsel %vm53_vm1, %v54_v16, %v52_v17 }
 0x13d   :  { %v63_v20 = vadd.f32 1e-06, %v55_v19  ;;  %v57_v21 = vmul.f32 %v115_v18, %v48_v13 }
 0x13f   :  { %116 = vrcp.f32 %v63_v20  ;;  %v59_v23 = vsel %vm58_vm2, %v48_v13, %v57_v21 }
 0x140   :  { %v62_v24 = vsel %vm60_vm3, %v61_v22, %v59_v23 }
 0x141   :  { %v64_v25 = vadd.f32 1e-06, %v62_v24 }
 0x143   :  { %118 = vrcp.f32 %v64_v25 }
 0x14c   :  { %v117_v26 = vpop.eup %116 }
 0x14d   :  { %v69_v28 = vmul.f32 %v117_v26, %v38_v4 }
 0x14f   :  { %v77_v30 = vmul.f32 %v106_v27, %v69_v28 }
 0x150   :  { %v119_v31 = vpop.eup %118 }
 0x151   :  { %v70_v32 = vmul.f32 %v119_v31, %v39_v8  ;;  %v85_v33 = vadd.f32 %v107_v29, %v77_v30 }
 0x153   :  { %v78_v34 = vmul.f32 %v106_v27, %v70_v32  ;;  %87 = vst [vmem:[#allocation5] sm:$0xff] %v85_v33 }
 0x155   :  { %v86_v35 = vadd.f32 %v107_v29, %v78_v34 }
 0x157   :  { %88 = vst [vmem:[#allocation5 + $0x8] sm:$0xff] %v86_v35 }
 0x158   :  { %151 = shalt.err (!%p148_p9)
}
 0x159   :  { %100 = dma.vmem_to_hbm [thread:$0]  %s95_s23, 256, %s209_s3, [#allocation4], %s165_s15, %s165_s15, %s166_s16  }
 0x15a   :  { %162 = dma.done.wait [#allocation4], 256  }
 0x15b   :  { %163 = vsyncadd [#allocation4], 4294967040 }
 0x15c   :  { %104 = vsyncpa [#allocation3], 1 }
 0x15d   :  { %105 = vsyncpa [#allocation4], 1 }

</bundles_post_ra>
